<compile_context>
chip_gen: v5e
topology: v5e:2x2
jax: 0.10.0
libtpu: 0.0.40
codegen_flags: <defaults>
</compile_context>

<pallas_src>
import functools
import math

import jax
import jax.numpy as jnp
from jax.experimental import pallas as pl
from jax.experimental.pallas import tpu as pltpu

_EPS = 1e-5
_NT_DIMS = (((1,), (1,)), ((), ()))      # contract last dim of both operands


def _discriminator_kernel(n_layers, use_bn, use_ln, use_sigmoid, *refs):
    """refs = (z_ref, [W_l, vec_l] * n_layers, w_out_ref, b_out_ref, out_ref).

    z_ref   : (tile_b, inp_dim)  bf16  VMEM (one batch tile)
    W_l     : (in_l, hid_l)      bf16  VMEM (constant block -> fetched once)
    vec_l   : (k, hid_l)         f32   VMEM rows = [bias, (bn_g, bn_b), (ln_g, ln_b)]
    w_out   : (1, hid_last)      bf16  VMEM
    b_out   : (1,)               f32   SMEM scalar
    out_ref : (1, 1, tile_b)     f32   VMEM (lane-dense output slab)
    """
    z_ref = refs[0]
    out_ref = refs[-1]
    b_out_ref = refs[-2]
    w_out_ref = refs[-3]
    layer_refs = refs[1:-3]

    act = z_ref[...]                                  # already bf16
    for l in range(n_layers):
        w_ref = layer_refs[2 * l]
        v_ref = layer_refs[2 * l + 1]

        # MXU matmul: bf16 operands, f32 accumulation.
        y = jnp.dot(act, w_ref[...], preferred_element_type=jnp.float32)
        y = y + v_ref[0:1, :]                         # bias row (f32)

        row = 1
        if use_bn:
            gamma = v_ref[row:row + 1, :]
            beta = v_ref[row + 1:row + 2, :]
            row += 2
            # BatchNorm1d training mode: batch (axis-0) stats, biased variance.
            mean = jnp.mean(y, axis=0, keepdims=True)
            var = jnp.mean((y - mean) ** 2, axis=0, keepdims=True)
            y = (y - mean) * jax.lax.rsqrt(var + _EPS) * gamma + beta
        if use_ln:
            gamma = v_ref[row:row + 1, :]
            beta = v_ref[row + 1:row + 2, :]
            row += 2
            mean = jnp.mean(y, axis=-1, keepdims=True)
            var = jnp.mean((y - mean) ** 2, axis=-1, keepdims=True)
            y = (y - mean) * jax.lax.rsqrt(var + _EPS) * gamma + beta

        # F.leaky_relu(y, 0.2): max(y, 0.2*y) is exact for slope 0.2.
        y = jnp.maximum(y, 0.2 * y)
        act = y.astype(jnp.bfloat16)                  # next MXU operand

    # Final hid -> 1 projection on the MXU, produced directly lane-dense:
    # (1, hid) x (tile, hid)^T_contract -> (1, tile).
    logit = jax.lax.dot_general(w_out_ref[...], act, dimension_numbers=_NT_DIMS,
                                preferred_element_type=jnp.float32)
    logit = logit + b_out_ref[0]
    if use_sigmoid:
        logit = jax.nn.sigmoid(logit)
    out_ref[...] = logit.reshape(out_ref.shape).astype(out_ref.dtype)


def init_discriminator_params(key, inp_dim, dims, use_bn, use_ln):
    """Synthetic PyTorch-shaped params.

    Hidden-layer weights are pre-transposed to (in, hid) and stored in bf16.
    Per-layer bias / BN-gamma / BN-beta / LN-gamma / LN-beta are packed into a
    single (k, hid) f32 array.  Output layer: (1, hid_last) bf16 weight row and
    a (1,) f32 bias scalar (placed in SMEM by the wrapper).
    """
    params = []
    curr = inp_dim
    for hid in dims:
        key, kw, kb = jax.random.split(key, 3)
        bound = 1.0 / math.sqrt(curr)
        w = jax.random.uniform(kw, (curr, hid), jnp.float32, -bound, bound)
        b = jax.random.uniform(kb, (1, hid), jnp.float32, -bound, bound)
        rows = [b]
        if use_bn:
            rows += [jnp.ones((1, hid), jnp.float32),
                     jnp.zeros((1, hid), jnp.float32)]
        if use_ln:
            rows += [jnp.ones((1, hid), jnp.float32),
                     jnp.zeros((1, hid), jnp.float32)]
        params.append(w.astype(jnp.bfloat16))             # MXU operand
        params.append(jnp.concatenate(rows, axis=0))       # packed (k, hid) f32
        curr = hid
    key, kw, kb = jax.random.split(key, 3)
    bound = 1.0 / math.sqrt(curr)
    params.append(jax.random.uniform(kw, (1, curr), jnp.float32,
                                     -bound, bound).astype(jnp.bfloat16))
    params.append(jax.random.uniform(kb, (1,), jnp.float32, -bound, bound))
    return params


def _round_up(x, m):
    return ((x + m - 1) // m) * m


def _pick_tile(B, tile_b, use_bn):
    if use_bn:
        # Full-batch block: exact axis-0 statistics (see TODO for tiled BN).
        return B
    if B > tile_b:
        return tile_b
    if B > 256:
        # Enough rows to split across both v7x TensorCores (grid_b == 2).
        half = _round_up(pl.cdiv(B, 2), 16)
        if half < B:
            return half
    return B


def discriminator_forward(z, params, dims, use_bn, use_ln, use_sigmoid,
                          tile_b=2048):
    B, inp_dim = z.shape
    n_layers = len(dims)

    # z should be supplied in bf16 (halves the dominant HBM stream); cast only
    # as a fallback (this is an extra XLA op -- prefer storing z in bf16).
    if z.dtype != jnp.bfloat16:
        z = z.astype(jnp.bfloat16)

    tile_b = max(16, _round_up(int(tile_b), 16))        # bf16 sublane-aligned
    tile = _pick_tile(B, tile_b, use_bn)
    grid_b = pl.cdiv(B, tile)                            # ragged tail allowed

    kernel = functools.partial(_discriminator_kernel, n_layers, use_bn, use_ln,
                               use_sigmoid)

    vmem = pltpu.MemorySpace.VMEM
    in_specs = [pl.BlockSpec((tile, inp_dim), lambda i: (i, 0),
                             memory_space=vmem)]
    for l in range(n_layers):
        w, v = params[2 * l], params[2 * l + 1]
        in_specs.append(pl.BlockSpec(w.shape, lambda i: (0, 0),
                                     memory_space=vmem))
        in_specs.append(pl.BlockSpec(v.shape, lambda i: (0, 0),
                                     memory_space=vmem))
    w_out = params[-2]
    in_specs.append(pl.BlockSpec(w_out.shape, lambda i: (0, 0),
                                 memory_space=vmem))
    in_specs.append(pl.BlockSpec(memory_space=pltpu.MemorySpace.SMEM))  # b_out

    out_specs = pl.BlockSpec((1, 1, tile), lambda i: (i, 0, 0),
                             memory_space=vmem)

    # Working-set based scoped-VMEM limit (keeps the un-tiled BN path robust),
    # clamped to the physical VMEM of the current chip.
    widths = [inp_dim] + list(dims)
    max_w = max(widths)
    param_bytes = sum(int(p.size) * p.dtype.itemsize for p in params)
    need = (4 * tile * inp_dim * 2          # z block, double-buffered
            + 6 * tile * max_w * 4          # f32 activation intermediates
            + 2 * param_bytes
            + 4 * tile * 4                  # output slab
            + (2 << 20))                    # slack / internal scratch
    try:
        phys = int(pltpu.get_tpu_info().vmem_capacity_bytes)
    except Exception:  # pragma: no cover - conservative fallback
        phys = 64 * 1024 * 1024
    vmem_limit = int(min(max(need, 32 * 1024 * 1024), phys))

    # Advisory cost estimate so XLA can schedule around this call.
    flops = 2 * B * sum(a * b for a, b in zip(widths[:-1], widths[1:]))
    flops += 2 * B * widths[-1]
    transcendentals = B * (n_layers * (int(use_bn) + int(use_ln))
                           + int(use_sigmoid))
    bytes_accessed = (int(z.size) * 2 + param_bytes + grid_b * tile * 4)

    out = pl.pallas_call(
        kernel,
        out_shape=jax.ShapeDtypeStruct((grid_b, 1, tile), jnp.float32),
        grid=(grid_b,),
        in_specs=in_specs,
        out_specs=out_specs,
        compiler_params=pltpu.CompilerParams(
            dimension_semantics=("parallel",),
            vmem_limit_bytes=vmem_limit),
        cost_estimate=pl.CostEstimate(flops=int(flops),
                                      transcendentals=int(transcendentals),
                                      bytes_accessed=int(bytes_accessed)),
    )(z, *params)

    return out.reshape(grid_b * tile)[:B].reshape(B, 1)


def _reference_forward(z, params, dims, use_bn, use_ln, use_sigmoid):
    """Plain-JAX reference mirroring the kernel math (bf16 matmul operands)."""
    act = z.astype(jnp.bfloat16)
    idx = 0
    for _ in dims:
        w, v = params[idx], params[idx + 1]
        idx += 2
        y = jnp.dot(act, w, preferred_element_type=jnp.float32) + v[0:1]
        row = 1
        if use_bn:
            g, b = v[row:row + 1], v[row + 1:row + 2]
            row += 2
            m = jnp.mean(y, axis=0, keepdims=True)
            var = jnp.mean((y - m) ** 2, axis=0, keepdims=True)
            y = (y - m) * jax.lax.rsqrt(var + _EPS) * g + b
        if use_ln:
            g, b = v[row:row + 1], v[row + 1:row + 2]
            row += 2
            m = jnp.mean(y, axis=-1, keepdims=True)
            var = jnp.mean((y - m) ** 2, axis=-1, keepdims=True)
            y = (y - m) * jax.lax.rsqrt(var + _EPS) * g + b
        y = jnp.maximum(y, 0.2 * y)
        act = y.astype(jnp.bfloat16)
    w_out, b_out = params[idx], params[idx + 1]
    logit = jax.lax.dot_general(w_out, act, dimension_numbers=_NT_DIMS,
                                preferred_element_type=jnp.float32)
    logit = logit + b_out[0]
    if use_sigmoid:
        logit = jax.nn.sigmoid(logit)
    return logit.reshape(-1, 1)


if __name__ == "__main__":
    def run_case(name, inp_dim, dims, use_bn, use_ln, use_sigmoid, bs, tile_b):
        key = jax.random.PRNGKey(0)
        key, kz = jax.random.split(key)
        # z supplied in bf16 so the kernel streams bf16 straight from HBM.
        z = jax.random.normal(kz, (bs, inp_dim), jnp.float32).astype(
            jnp.bfloat16)
        params = init_discriminator_params(key, inp_dim, dims, use_bn, use_ln)
        out = discriminator_forward(z, params, dims, use_bn, use_ln,
                                    use_sigmoid, tile_b=tile_b)
        out = jax.block_until_ready(out)
        ref = _reference_forward(z, params, dims, use_bn, use_ln, use_sigmoid)
        assert out.shape == (bs, 1), (name, out.shape)
        assert jnp.allclose(out, ref, atol=2e-3, rtol=2e-3), \
            f"{name}: mismatch vs reference"

    # Mirrors Discriminator(inp_dim=32, use_bn=False, use_ln=True,
    #                       use_sigmoid=True, dims=(64, 32)).
    run_case("ln_sigmoid_small", 32, (64, 32), False, True, True,
             bs=8, tile_b=2048)
    # Gridded batch path with a ragged (un-padded) last block, "parallel" axis.
    run_case("ln_sigmoid_grid", 32, (64, 32), False, True, True,
             bs=300, tile_b=128)
    # Moderate batch: split into two tiles so both v7x TensorCores get work.
    run_case("ln_sigmoid_split", 32, (64, 32), False, True, True,
             bs=512, tile_b=2048)
    # BatchNorm path (kept un-tiled so axis-0 stats match PyTorch semantics).
    run_case("bn_logits", 32, (64,), True, False, False,
             bs=16, tile_b=2048)

    print("KERNEL_OK")
</pallas_src>

<mosaic_0001>
module attributes {stable_mosaic.version = 11 : i64} {
  func.func @_discriminator_kernel(%arg0: i32, %arg1: memref<8x32xbf16, #tpu.memory_space<vmem>>, %arg2: memref<32x64xbf16, #tpu.memory_space<vmem>>, %arg3: memref<3x64xf32, #tpu.memory_space<vmem>>, %arg4: memref<64x32xbf16, #tpu.memory_space<vmem>>, %arg5: memref<3x32xf32, #tpu.memory_space<vmem>>, %arg6: memref<1x32xbf16, #tpu.memory_space<vmem>>, %arg7: memref<1xf32, #tpu.memory_space<smem>>, %arg8: memref<1x1x8xf32, #tpu.memory_space<vmem>>) attributes {dimension_semantics = [#tpu.dimension_semantics<parallel>], iteration_bounds = array<i64: 1>, scalar_prefetch = 0 : i64, scratch_operands = 0 : i64, tpu.core_type = #tpu.core_type<tc>, window_params = [{transform_indices = @transform_0, window_bounds = array<i64: 8, 32>}, {pipeline_mode = #tpu.pipeline_mode<synchronous>, transform_indices = @transform_1, window_bounds = array<i64: 32, 64>}, {pipeline_mode = #tpu.pipeline_mode<synchronous>, transform_indices = @transform_2, window_bounds = array<i64: 3, 64>}, {pipeline_mode = #tpu.pipeline_mode<synchronous>, transform_indices = @transform_3, window_bounds = array<i64: 64, 32>}, {pipeline_mode = #tpu.pipeline_mode<synchronous>, transform_indices = @transform_4, window_bounds = array<i64: 3, 32>}, {pipeline_mode = #tpu.pipeline_mode<synchronous>, transform_indices = @transform_5, window_bounds = array<i64: 1, 32>}, {transform_indices = @transform_6, window_bounds = array<i64: 1>}, {transform_indices = @transform_7, window_bounds = array<i64: 1, 1, 8>}]} {
    %c0 = arith.constant 0 : index
    %c0_0 = arith.constant 0 : index
    %0 = vector.load %arg1[%c0, %c0_0] : memref<8x32xbf16, #tpu.memory_space<vmem>>, vector<8x32xbf16>
    %c0_1 = arith.constant 0 : index
    %c0_2 = arith.constant 0 : index
    %1 = vector.load %arg2[%c0_1, %c0_2] : memref<32x64xbf16, #tpu.memory_space<vmem>>, vector<32x64xbf16>
    %cst = arith.constant dense<0.000000e+00> : vector<8x64xf32>
    %2 = tpu.matmul %0, %1, %cst {dimension_numbers = #tpu.dot_dimension_numbers<[1], [0], [0], [1], [0, 0, 1, 1], [], []>} : vector<8x32xbf16>, vector<32x64xbf16>, vector<8x64xf32> -> vector<8x64xf32>
    %c0_3 = arith.constant 0 : index
    %c0_4 = arith.constant 0 : index
    %3 = vector.load %arg3[%c0_3, %c0_4] : memref<3x64xf32, #tpu.memory_space<vmem>>, vector<1x64xf32>
    %4 = vector.broadcast %3 : vector<1x64xf32> to vector<8x64xf32>
    %5 = arith.addf %2, %4 : vector<8x64xf32>
    %c1 = arith.constant 1 : index
    %c0_5 = arith.constant 0 : index
    %6 = vector.load %arg3[%c1, %c0_5] : memref<3x64xf32, #tpu.memory_space<vmem>>, vector<1x64xf32>
    %c2 = arith.constant 2 : index
    %c0_6 = arith.constant 0 : index
    %7 = vector.load %arg3[%c2, %c0_6] : memref<3x64xf32, #tpu.memory_space<vmem>>, vector<1x64xf32>
    %cst_7 = arith.constant dense<0.000000e+00> : vector<8xf32>
    %8 = vector.multi_reduction <add>, %5, %cst_7 [1] : vector<8x64xf32> to vector<8xf32>
    %9 = vector.shape_cast %8 : vector<8xf32> to vector<8x1xf32>
    %cst_8 = arith.constant 6.400000e+01 : f32
    %10 = vector.broadcast %cst_8 : f32 to vector<8x1xf32>
    %11 = arith.divf %9, %10 : vector<8x1xf32>
    %12 = vector.broadcast %11 : vector<8x1xf32> to vector<8x64xf32>
    %13 = arith.subf %5, %12 : vector<8x64xf32>
    %14 = arith.mulf %13, %13 : vector<8x64xf32>
    %cst_9 = arith.constant dense<0.000000e+00> : vector<8xf32>
    %15 = vector.multi_reduction <add>, %14, %cst_9 [1] : vector<8x64xf32> to vector<8xf32>
    %16 = vector.shape_cast %15 : vector<8xf32> to vector<8x1xf32>
    %cst_10 = arith.constant 6.400000e+01 : f32
    %17 = vector.broadcast %cst_10 : f32 to vector<8x1xf32>
    %18 = arith.divf %16, %17 : vector<8x1xf32>
    %19 = vector.broadcast %11 : vector<8x1xf32> to vector<8x64xf32>
    %20 = arith.subf %5, %19 : vector<8x64xf32>
    %cst_11 = arith.constant 9.99999974E-6 : f32
    %21 = vector.broadcast %cst_11 : f32 to vector<8x1xf32>
    %22 = arith.addf %18, %21 : vector<8x1xf32>
    %23 = math.rsqrt %22 : vector<8x1xf32>
    %24 = vector.broadcast %23 : vector<8x1xf32> to vector<8x64xf32>
    %25 = arith.mulf %20, %24 : vector<8x64xf32>
    %26 = vector.broadcast %6 : vector<1x64xf32> to vector<8x64xf32>
    %27 = arith.mulf %25, %26 : vector<8x64xf32>
    %28 = vector.broadcast %7 : vector<1x64xf32> to vector<8x64xf32>
    %29 = arith.addf %27, %28 : vector<8x64xf32>
    %cst_12 = arith.constant 2.000000e-01 : f32
    %30 = vector.broadcast %cst_12 : f32 to vector<8x64xf32>
    %31 = arith.mulf %30, %29 : vector<8x64xf32>
    %32 = arith.maximumf %29, %31 : vector<8x64xf32>
    %33 = arith.truncf %32 : vector<8x64xf32> to vector<8x64xbf16>
    %c0_13 = arith.constant 0 : index
    %c0_14 = arith.constant 0 : index
    %34 = vector.load %arg4[%c0_13, %c0_14] : memref<64x32xbf16, #tpu.memory_space<vmem>>, vector<64x32xbf16>
    %cst_15 = arith.constant dense<0.000000e+00> : vector<8x32xf32>
    %35 = tpu.matmul %33, %34, %cst_15 {dimension_numbers = #tpu.dot_dimension_numbers<[1], [0], [0], [1], [0, 0, 1, 1], [], []>} : vector<8x64xbf16>, vector<64x32xbf16>, vector<8x32xf32> -> vector<8x32xf32>
    %c0_16 = arith.constant 0 : index
    %c0_17 = arith.constant 0 : index
    %36 = vector.load %arg5[%c0_16, %c0_17] : memref<3x32xf32, #tpu.memory_space<vmem>>, vector<1x32xf32>
    %37 = vector.broadcast %36 : vector<1x32xf32> to vector<8x32xf32>
    %38 = arith.addf %35, %37 : vector<8x32xf32>
    %c1_18 = arith.constant 1 : index
    %c0_19 = arith.constant 0 : index
    %39 = vector.load %arg5[%c1_18, %c0_19] : memref<3x32xf32, #tpu.memory_space<vmem>>, vector<1x32xf32>
    %c2_20 = arith.constant 2 : index
    %c0_21 = arith.constant 0 : index
    %40 = vector.load %arg5[%c2_20, %c0_21] : memref<3x32xf32, #tpu.memory_space<vmem>>, vector<1x32xf32>
    %cst_22 = arith.constant dense<0.000000e+00> : vector<8xf32>
    %41 = vector.multi_reduction <add>, %38, %cst_22 [1] : vector<8x32xf32> to vector<8xf32>
    %42 = vector.shape_cast %41 : vector<8xf32> to vector<8x1xf32>
    %cst_23 = arith.constant 3.200000e+01 : f32
    %43 = vector.broadcast %cst_23 : f32 to vector<8x1xf32>
    %44 = arith.divf %42, %43 : vector<8x1xf32>
    %45 = vector.broadcast %44 : vector<8x1xf32> to vector<8x32xf32>
    %46 = arith.subf %38, %45 : vector<8x32xf32>
    %47 = arith.mulf %46, %46 : vector<8x32xf32>
    %cst_24 = arith.constant dense<0.000000e+00> : vector<8xf32>
    %48 = vector.multi_reduction <add>, %47, %cst_24 [1] : vector<8x32xf32> to vector<8xf32>
    %49 = vector.shape_cast %48 : vector<8xf32> to vector<8x1xf32>
    %cst_25 = arith.constant 3.200000e+01 : f32
    %50 = vector.broadcast %cst_25 : f32 to vector<8x1xf32>
    %51 = arith.divf %49, %50 : vector<8x1xf32>
    %52 = vector.broadcast %44 : vector<8x1xf32> to vector<8x32xf32>
    %53 = arith.subf %38, %52 : vector<8x32xf32>
    %cst_26 = arith.constant 9.99999974E-6 : f32
    %54 = vector.broadcast %cst_26 : f32 to vector<8x1xf32>
    %55 = arith.addf %51, %54 : vector<8x1xf32>
    %56 = math.rsqrt %55 : vector<8x1xf32>
    %57 = vector.broadcast %56 : vector<8x1xf32> to vector<8x32xf32>
    %58 = arith.mulf %53, %57 : vector<8x32xf32>
    %59 = vector.broadcast %39 : vector<1x32xf32> to vector<8x32xf32>
    %60 = arith.mulf %58, %59 : vector<8x32xf32>
    %61 = vector.broadcast %40 : vector<1x32xf32> to vector<8x32xf32>
    %62 = arith.addf %60, %61 : vector<8x32xf32>
    %cst_27 = arith.constant 2.000000e-01 : f32
    %63 = vector.broadcast %cst_27 : f32 to vector<8x32xf32>
    %64 = arith.mulf %63, %62 : vector<8x32xf32>
    %65 = arith.maximumf %62, %64 : vector<8x32xf32>
    %66 = arith.truncf %65 : vector<8x32xf32> to vector<8x32xbf16>
    %c0_28 = arith.constant 0 : index
    %c0_29 = arith.constant 0 : index
    %67 = vector.load %arg6[%c0_28, %c0_29] : memref<1x32xbf16, #tpu.memory_space<vmem>>, vector<1x32xbf16>
    %cst_30 = arith.constant dense<0.000000e+00> : vector<1x8xf32>
    %68 = tpu.matmul %67, %66, %cst_30 {dimension_numbers = #tpu.dot_dimension_numbers<[1], [1], [0], [0], [0, 0, 1, 0], [], []>} : vector<1x32xbf16>, vector<8x32xbf16>, vector<1x8xf32> -> vector<1x8xf32>
    %c0_31 = arith.constant 0 : index
    %69 = memref.load %arg7[%c0_31] : memref<1xf32, #tpu.memory_space<smem>>
    %70 = vector.broadcast %69 : f32 to vector<1x8xf32>
    %71 = arith.addf %68, %70 : vector<1x8xf32>
    %72 = arith.negf %71 : vector<1x8xf32>
    %73 = math.exp %72 : vector<1x8xf32>
    %cst_32 = arith.constant 1.000000e+00 : f32
    %74 = vector.broadcast %cst_32 : f32 to vector<1x8xf32>
    %75 = arith.addf %74, %73 : vector<1x8xf32>
    %76 = arith.divf %74, %75 : vector<1x8xf32>
    %77 = vector.shape_cast %76 : vector<1x8xf32> to vector<1x1x8xf32>
    %c0_33 = arith.constant 0 : index
    %c0_34 = arith.constant 0 : index
    %c0_35 = arith.constant 0 : index
    %78 = vector.load %arg8[%c0_33, %c0_34, %c0_35] : memref<1x1x8xf32, #tpu.memory_space<vmem>>, vector<1x1x8xf32>
    tpu.vector_store %arg8[%c0_33, %c0_34, %c0_35], %77 {strides = array<i32>} : memref<1x1x8xf32, #tpu.memory_space<vmem>>, vector<1x1x8xf32>,
    return
  }
  func.func @transform_0(%arg0: i32) -> (i32, i32) {
    %c0_i32 = arith.constant 0 : i32
    %c0_i32_0 = arith.constant 0 : i32
    return %arg0, %c0_i32 : i32, i32
  }
  func.func @transform_1(%arg0: i32) -> (i32, i32) {
    %c0_i32 = arith.constant 0 : i32
    %c0_i32_0 = arith.constant 0 : i32
    %c0_i32_1 = arith.constant 0 : i32
    return %c0_i32, %c0_i32_0 : i32, i32
  }
  func.func @transform_2(%arg0: i32) -> (i32, i32) {
    %c0_i32 = arith.constant 0 : i32
    %c0_i32_0 = arith.constant 0 : i32
    %c0_i32_1 = arith.constant 0 : i32
    return %c0_i32, %c0_i32_0 : i32, i32
  }
  func.func @transform_3(%arg0: i32) -> (i32, i32) {
    %c0_i32 = arith.constant 0 : i32
    %c0_i32_0 = arith.constant 0 : i32
    %c0_i32_1 = arith.constant 0 : i32
    return %c0_i32, %c0_i32_0 : i32, i32
  }
  func.func @transform_4(%arg0: i32) -> (i32, i32) {
    %c0_i32 = arith.constant 0 : i32
    %c0_i32_0 = arith.constant 0 : i32
    %c0_i32_1 = arith.constant 0 : i32
    return %c0_i32, %c0_i32_0 : i32, i32
  }
  func.func @transform_5(%arg0: i32) -> (i32, i32) {
    %c0_i32 = arith.constant 0 : i32
    %c0_i32_0 = arith.constant 0 : i32
    %c0_i32_1 = arith.constant 0 : i32
    return %c0_i32, %c0_i32_0 : i32, i32
  }
  func.func @transform_6(%arg0: i32) -> i32 {
    %c0_i32 = arith.constant 0 : i32
    %c0_i32_0 = arith.constant 0 : i32
    return %c0_i32 : i32
  }
  func.func @transform_7(%arg0: i32) -> (i32, i32, i32) {
    %c0_i32 = arith.constant 0 : i32
    %c0_i32_0 = arith.constant 0 : i32
    %c0_i32_1 = arith.constant 0 : i32
    return %arg0, %c0_i32, %c0_i32_0 : i32, i32, i32
  }
}

</mosaic_0001>

<bundles_post_ra>
// kernel: tpu_custom_call.1
= control target key start
LH: loop header
LB: loop body
LE: loop exit
PB: predicated region body
PF: predicated region fallthrough
CT: control target
= control target key end

     0   :  { %s431_s0 = inlined_call_operand.vmem [shape: bf16[8,32], index: 0, kind: input, shape index: {}]   ;;  %s432_s1 = inlined_call_operand.vmem [shape: bf16[32,64], index: 1, kind: input, shape index: {}]   ;;  %s433_s2 = inlined_call_operand.vmem [shape: f32[3,64], index: 2, kind: input, shape index: {}]   ;;  %s434_s3 = inlined_call_operand.vmem [shape: bf16[64,32], index: 3, kind: input, shape index: {}]   ;;  %s435_s4 = inlined_call_operand.vmem [shape: f32[3,32], index: 4, kind: input, shape index: {}]   ;;  %s436_s5 = inlined_call_operand.vmem [shape: bf16[1,32], index: 5, kind: input, shape index: {}]   ;;  %s437_s6 = inlined_call_operand.<no memory space> [shape: f32[1], index: 6, kind: input, shape index: {}]   ;;  %s438_s7 = inlined_call_operand.hbm [shape: f32[1,1,8], index: 7, kind: output, shape index: {}]  }
   0x1   :  { %v280_v0 = vld [vmem:[%s432_s1 + $0x8] sm:$0xff]  ;;  %v279_v1 = vld [vmem:[%s432_s1] sm:$0xff] }
   0x2   :  { %58 = vmatpush.bf16.msra.mxu0 %v280_v0 }
   0x3   :  { %13 = vsyncpa [#allocation4], 0  ;;  %v29_v2 = vld [vmem:[%s431_s0] sm:$0xf]  ;;  %vm48_vm0 = vcmask 261120   ;;  %vm67_vm1 = vcmask 523264  }
   0x4   :  { %v288_v3 = vld [vmem:[%s433_s2] ss:$0 sm:$0xff]  ;;  %v332_v8 = vmov 64.0   ;;  %v284_v20 = vld [vmem:[%s434_s3 + $0x18] sm:$0xff]  ;;  %v283_v21 = vld [vmem:[%s434_s3 + $0x10] sm:$0xff]  ;;  %v333_v47 = vmov 32.0  }
   0x5   :  { %294 = vrcp.f32 %v332_v8  ;;  %145 = vmatpush.bf16.msra.mxu1 %v284_v20  ;;  %v282_v22 = vld [vmem:[%s434_s3 + $0x8] sm:$0xff]  ;;  %v281_v23 = vld [vmem:[%s434_s3] sm:$0xff]  ;;  %vm233_vm13 = vcmask 57344  }
   0x6   :  { %59 = vmatpush.bf16.msra.mxu0 %v279_v1  ;;  %v289_v33 = vld [vmem:[%s433_s2 + $0x1] ss:$0 sm:$0xff]  ;;  %v290_v36 = vld [vmem:[%s433_s2 + $0x2] ss:$0 sm:$0xff]  ;;  %v291_v42 = vld [vmem:[%s435_s4] ss:$0 sm:$0xff] }
   0x9   :  { %259 = vmatmul.msk.bf16.vlgmr.msra.gmra.mxu0 %vm48_vm0, %v29_v2  ;;  %146 = vmatpush.bf16.msra.mxu1 %v283_v21 }
   0xb   :  { %v295_v9 = vpop.eup %294 }
   0xc   :  { %v72_v10 = vmul.f32 64.0, %v295_v9  ;;  %vm76_vm2 = vweird.f32 %v295_v9 }
   0xd   :  { %147 = vmatpush.bf16.msra.mxu1 %v282_v22 }
   0xe   :  { %v73_v11 = vsub.f32 1.0, %v72_v10 }
  0x10   :  { %v74_v12 = vmul.f32 %v295_v9, %v73_v11 }
  0x11   :  { %148 = vmatpush.bf16.msra.mxu1 %v281_v23 }
  0x12   :  { %v75_v13 = vadd.f32 %v295_v9, %v74_v12 }
  0x14   :  { %v77_v14 = vsel %vm76_vm2, %v295_v9, %v75_v13 }
  0x86   :  { %v61_v4 = vpop.f32.mrf.mxu0 }
  0x87   :  { %v62_v5 = vadd.f32 %v288_v3, %v61_v4  ;;  %v292_v4 = vld [vmem:[%s435_s4 + $0x1] ss:$0 sm:$0xff] }
  0x89   :  { %v68_v6 = vsel %vm67_vm1, %v62_v5, 0.0 }
  0x8a   :  { %69 = vadd.xlane.f32.xlu0 %v68_v6 }
  0x8e   :  { %v63_v7 = vpop.f32.mrf.mxu0 }
  0x8f   :  { %v293_v7 = vld [vmem:[%s435_s4 + $0x2] ss:$0 sm:$0xff]  ;;  %s334_s4 = smov [#allocation3]  }
  0xfd   :  { %v70_v15 = vpop.xlane.xlu0 %69 }
  0xfe   :  { %v78_v16 = vmul.f32 %v77_v14, %v70_v15  ;;  %v194_v15 = vstv %s437_s6  ;;  %s242_s6 = sshll.u32 %s438_s7, 4  ;;  %s243_s6 = int_to_ptr.hbm [resolvable:$true] %s242_s6 }
 0x100   :  { %v79_v17 = vsub.f32 %v62_v5, %v78_v16 }
 0x102   :  { %v80_v18 = vmul.f32 %v79_v17, %v79_v17 }
 0x104   :  { %v81_v19 = vsel %vm67_vm1, %v80_v18, 0.0 }
 0x105   :  { %82 = vadd.xlane.f32.xlu0 %v81_v19 }
 0x178   :  { %v83_v24 = vpop.xlane.xlu0 %82 }
 0x179   :  { %v84_v25 = vmul.f32 %v83_v24, %v77_v14  ;;  %v192_v14 = vld [vmem:[%s436_s5] sm:$0x1]  ;;  %s240_s5 = sshll.u32 %s334_s4, 4  ;;  %s241_s5 = int_to_ptr.vmem [resolvable:$true] %s240_s5 }
 0x17b   :  { %v85_v26 = vadd.f32 1e-05, %v84_v25 }
 0x17d   :  { %296 = vrsqrt.f32 %v85_v26  ;;  %vm92_vm4 = vweird.f32 %v85_v26 }
 0x17e   :  { %298 = vrcp.f32 %v333_v47 }
 0x183   :  { %v297_v27 = vpop.eup %296 }
 0x184   :  { %v87_v28 = vmul.f32 %v297_v27, %v85_v26  ;;  %vm93_vm3 = vweird.f32 %v297_v27  ;;  %v299_v48 = vpop.eup %298 }
 0x185   :  { %vm94_vm5 = vmor %vm92_vm4, %vm93_vm3  ;;  %v160_v49 = vmul.f32 32.0, %v299_v48  ;;  %vm164_vm6 = vweird.f32 %v299_v48 }
 0x186   :  { %v88_v29 = vmul.f32 %v297_v27, %v87_v28 }
 0x187   :  { %v161_v50 = vsub.f32 1.0, %v160_v49 }
 0x188   :  { %v89_v30 = vmul.f32 0.5, %v88_v29 }
 0x189   :  { %v162_v51 = vmul.f32 %v299_v48, %v161_v50 }
 0x18a   :  { %v90_v31 = vsub.f32 1.5, %v89_v30 }
 0x18b   :  { %v163_v52 = vadd.f32 %v299_v48, %v162_v51 }
 0x18c   :  { %v91_v32 = vmul.f32 %v297_v27, %v90_v31 }
 0x18d   :  { %v165_v53 = vsel %vm164_vm6, %v299_v48, %v163_v52 }
 0x18e   :  { %v95_v34 = vsel %vm94_vm5, %v297_v27, %v91_v32 }
 0x18f   :  { %v96_v35 = vmul.f32 %v95_v34, %v79_v17 }
 0x191   :  { %v98_v37 = vmul.f32 %v289_v33, %v96_v35 }
 0x193   :  { %v100_v38 = vadd.f32 %v290_v36, %v98_v37 }
 0x195   :  { %v101_v39 = vmul.f32 0.2, %v100_v38 }
 0x197   :  { %v102_v40 = vmax.f32 %v100_v38, %v101_v39 }
 0x199   :  { %v103_v41 = vpack.c.bf16 %v102_v40, %v102_v40 }
 0x19b   :  { %276 = vmatmul.msk.bf16.vlgmr.msra.gmra.mxu1 %vm67_vm1, %v103_v41 }
 0x218   :  { %v150_v43 = vpop.f32.mrf.mxu1 }
 0x219   :  { %v151_v44 = vadd.f32 %v291_v42, %v150_v43 }
 0x21b   :  { %v156_v45 = vsel %vm48_vm0, %v151_v44, 0.0 }
 0x21c   :  { %157 = vadd.xlane.f32.xlu1 %v156_v45 }
 0x220   :  { %v152_v46 = vpop.f32.mrf.mxu1 }
 0x28f   :  { %v158_v54 = vpop.xlane.xlu1 %157 }
 0x290   :  { %v166_v55 = vmul.f32 %v165_v53, %v158_v54 }
 0x292   :  { %v167_v56 = vsub.f32 %v151_v44, %v166_v55 }
 0x294   :  { %v168_v57 = vmul.f32 %v167_v56, %v167_v56 }
 0x296   :  { %v169_v58 = vsel %vm48_vm0, %v168_v57, 0.0 }
 0x297   :  { %170 = vadd.xlane.f32.xlu1 %v169_v58 }
 0x30a   :  { %v171_v59 = vpop.xlane.xlu1 %170 }
 0x30b   :  { %v172_v60 = vmul.f32 %v171_v59, %v165_v53 }
 0x30d   :  { %v173_v61 = vadd.f32 1e-05, %v172_v60 }
 0x30f   :  { %300 = vrsqrt.f32 %v173_v61  ;;  %vm180_vm8 = vweird.f32 %v173_v61 }
 0x315   :  { %v301_v62 = vpop.eup %300 }
 0x316   :  { %v175_v63 = vmul.f32 %v301_v62, %v173_v61  ;;  %vm181_vm7 = vweird.f32 %v301_v62 }
 0x317   :  { %vm182_vm9 = vmor %vm180_vm8, %vm181_vm7 }
 0x318   :  { %v176_v0 = vmul.f32 %v301_v62, %v175_v63 }
 0x31a   :  { %v177_v1 = vmul.f32 0.5, %v176_v0 }
 0x31c   :  { %v178_v2 = vsub.f32 1.5, %v177_v1 }
 0x31e   :  { %v179_v3 = vmul.f32 %v301_v62, %v178_v2 }
 0x320   :  { %v183_v5 = vsel %vm182_vm9, %v301_v62, %v179_v3 }
 0x321   :  { %v184_v6 = vmul.f32 %v183_v5, %v167_v56 }
 0x323   :  { %v186_v8 = vmul.f32 %v292_v4, %v184_v6 }
 0x325   :  { %v188_v9 = vadd.f32 %v293_v7, %v186_v8 }
 0x327   :  { %v189_v10 = vmul.f32 0.2, %v188_v9 }
 0x329   :  { %v190_v11 = vmax.f32 %v188_v9, %v189_v10 }
 0x32b   :  { %v191_v12 = vpack.c.bf16 %v190_v11, %v190_v11 }
 0x32d   :  { %v199_v13 = vsel %vm48_vm0, %v191_v12, 0 }
 0x32e   :  { %208 = vmatpush.bf16.xpose.msra.mxu2 %v199_v13 }
 0x335   :  { %277 = vmatmul.msk.bf16.vlgmr.msra.gmra.mxu2 %vm48_vm0, %v192_v14 }
 0x3b8   :  { %v210_v16 = vpop.f32.mrf.mxu2 }
 0x3b9   :  { %v211_v17 = vadd.f32 %v210_v16, %v194_v15 }
 0x3bb   :  { %v278_v18 = vmul.f32 -1.442695, %v211_v17 }
 0x3bd   :  { %302 = vpow2.f32 %v278_v18 }
 0x3c0   :  { %v212_v19 = vpop.f32.mrf.mxu2 }
 0x3c3   :  { %v303_v20 = vpop.eup %302 }
 0x3c4   :  { %v217_v21 = vadd.f32 1.0, %v303_v20 }
 0x3c6   :  { %304 = vrcp.f32 %v217_v21  ;;  %v229_v25 = vand.u32 2147483648, %v217_v21  ;;  %v227_v27 = vand.u32 2147483647, %v217_v21  ;;  %vm223_vm11 = vweird.f32 %v217_v21 }
 0x3c8   :  { %v230_v29 = vor.u32 1.1754944e-38, %v229_v25  ;;  %vm228_vm14 = vcmp.eq.f32.partialorder %v227_v27, 8.507059e+37 }
 0x3cc   :  { %v305_v22 = vpop.eup %304 }
 0x3cd   :  { %v219_v23 = vmul.f32 %v305_v22, %v217_v21  ;;  %vm224_vm10 = vweird.f32 %v305_v22 }
 0x3ce   :  { %vm225_vm12 = vmor %vm223_vm11, %vm224_vm10 }
 0x3cf   :  { %v220_v24 = vsub.f32 1.0, %v219_v23 }
 0x3d1   :  { %v221_v26 = vmul.f32 %v305_v22, %v220_v24 }
 0x3d3   :  { %v222_v28 = vadd.f32 %v305_v22, %v221_v26 }
 0x3d5   :  { %v226_v30 = vsel %vm225_vm12, %v305_v22, %v222_v28 }
 0x3d6   :  { %v231_v31 = vsel %vm228_vm14, %v230_v29, %v226_v30 }
 0x3d7   :  { %234 = vst.msk [vmem:[#allocation3] sm:$0x1] %vm233_vm13, %v231_v31 }
 0x3d8   :  { %245 = dma.vmem_to_hbm [thread:$0]  %s241_s5, 16, %s243_s6, [#allocation4]  }
 0x3d9   :  { %330 = dma.done.wait [#allocation4], 16  }
 0x3da   :  { %331 = vsyncadd [#allocation4], 4294967280 }
 0x3db   :  { %250 = vsyncpa [#allocation4], 1 }

</bundles_post_ra>
